<compile_context>
chip_gen: v7x
topology: tpu7x:2x2x1
jax: 0.10.0
libtpu: 0.0.40
codegen_flags: <defaults>
</compile_context>

<pallas_src>
import functools

import jax
import jax.numpy as jnp
from jax.experimental import pallas as pl
from jax.experimental.pallas import tpu as pltpu


def _dnn_kernel(x_ref, *refs, layer_dims):
    """refs = (w0, w1, ..., w_{L-1}, b_packed, out_ref).

    x_ref, w_i: bfloat16 (MXU operands); b_packed, out: float32.
    """
    out_ref = refs[-1]
    b_ref = refs[-2]           # (1, sum(layer_dims)) f32, all biases packed
    w_refs = refs[:-2]

    num_layers = len(layer_dims)
    h = x_ref[...]                                      # bf16 [TB, D_in]
    off = 0
    for i in range(num_layers):                         # tiny static layer count
        d = layer_dims[i]
        # bf16 x bf16 -> f32 accumulation on the MXU.
        acc = jnp.dot(h, w_refs[i][...], preferred_element_type=jnp.float32)
        acc = acc + b_ref[:, off:off + d]               # f32 bias add (VPU)
        off += d
        if i != num_layers - 1:
            acc = jnp.maximum(acc, 0.0)                 # ReLU in f32 (v5e-safe)
            h = acc.astype(jnp.bfloat16)                # narrow for next matmul
        else:
            out_ref[...] = acc.astype(out_ref.dtype)
    # TODO(synk): nn.Dropout is identity in eval mode (implemented as such);
    # training-mode dropout (pltpu.prng_*) and BatchNorm1d (bn=True) are not
    # implemented here.


def dnn_forward(x, weights, biases, *, block_b=512):
    """Eval-mode forward of DNN. x: [B, input_dim] -> [B, layers[-1]] (f32)."""
    B, d_in = x.shape
    d_out = int(weights[-1].shape[1])
    layer_dims = tuple(int(w.shape[1]) for w in weights)

    # One big tile if the batch fits; otherwise 512-row tiles (Pallas masks the
    # ragged last tile's out-of-bounds writeback, so no host pad/slice needed).
    tb = B if B <= block_b else block_b
    num_tiles = pl.cdiv(B, tb)

    # bf16 operands for the MXU; biases stay f32 for the VPU epilogue.
    x_bf = x.astype(jnp.bfloat16)
    w_bf = [w.astype(jnp.bfloat16) for w in weights]
    b_packed = jnp.concatenate([b.reshape(1, -1).astype(jnp.float32)
                                for b in biases], axis=1)   # (1, sum(layers))

    in_specs = [pl.BlockSpec((tb, d_in), lambda i: (i, 0))]
    for w in w_bf:
        # Grid-invariant weight blocks: resident in VMEM across batch tiles.
        in_specs.append(pl.BlockSpec(w.shape, lambda i: (0, 0)))
    in_specs.append(pl.BlockSpec(b_packed.shape, lambda i: (0, 0)))

    # Megacore sharding only pays off with plenty of tiles per core (v7x).
    dim_sems = ("parallel",) if num_tiles >= 8 else ("arbitrary",)

    out = pl.pallas_call(
        functools.partial(_dnn_kernel, layer_dims=layer_dims),
        out_shape=jax.ShapeDtypeStruct((B, d_out), jnp.float32),
        grid=(num_tiles,),
        in_specs=in_specs,
        out_specs=pl.BlockSpec((tb, d_out), lambda i: (i, 0)),
        compiler_params=pltpu.CompilerParams(dimension_semantics=dim_sems),
    )(x_bf, *w_bf, b_packed)
    return out


if __name__ == "__main__":
    key = jax.random.PRNGKey(0)

    # Module config: DNN(input_dim=32, layers=[64, 32, 16], act='relu',
    #                    drop=0.5, bn=False), eval mode.
    input_dim = 32
    layers = [64, 32, 16]
    B = 200

    # --- deterministic parameter init (stand-in for weight_init) -------------
    dims = [input_dim] + layers
    keys = jax.random.split(key, 2 * len(layers) + 1)
    weights, biases = [], []
    for i in range(len(layers)):
        fan_in = dims[i]
        w = jax.random.normal(keys[2 * i], (dims[i], dims[i + 1]),
                              dtype=jnp.float32) * (1.0 / jnp.sqrt(fan_in))
        b = jax.random.normal(keys[2 * i + 1], (dims[i + 1],),
                              dtype=jnp.float32) * 0.01
        weights.append(w)
        biases.append(b)

    # --- deterministic example input ------------------------------------------
    x = jax.random.normal(keys[-1], (B, input_dim), dtype=jnp.float32)

    # --- run kernel (one jitted dispatch: bf16 casts + pallas_call) -----------
    fwd = jax.jit(dnn_forward)
    out = jax.block_until_ready(fwd(x, weights, biases))

    # --- pure-JAX reference mirroring kernel numerics --------------------------
    # (bf16-rounded MXU operands, f32 accumulation, f32 bias/ReLU epilogue)
    h = x.astype(jnp.bfloat16).astype(jnp.float32)
    for i in range(len(layers)):
        w = weights[i].astype(jnp.bfloat16).astype(jnp.float32)
        h = jnp.dot(h, w, precision=jax.lax.Precision.HIGHEST) + biases[i]
        if i != len(layers) - 1:
            h = jnp.maximum(h, 0.0)
            h = h.astype(jnp.bfloat16).astype(jnp.float32)
    ref = h

    assert out.shape == (B, layers[-1]), out.shape
    assert jnp.allclose(out, ref, atol=2e-3, rtol=2e-3), (
        float(jnp.max(jnp.abs(out - ref))))

    print("KERNEL_OK")
</pallas_src>

<mosaic_0001>
module attributes {stable_mosaic.version = 11 : i64} {
  func.func @_dnn_kernel(%arg0: i32, %arg1: memref<200x32xbf16, #tpu.memory_space<vmem>>, %arg2: memref<32x64xbf16, #tpu.memory_space<vmem>>, %arg3: memref<64x32xbf16, #tpu.memory_space<vmem>>, %arg4: memref<32x16xbf16, #tpu.memory_space<vmem>>, %arg5: memref<1x112xf32, #tpu.memory_space<vmem>>, %arg6: memref<200x16xf32, #tpu.memory_space<vmem>>) attributes {dimension_semantics = [#tpu.dimension_semantics<arbitrary>], iteration_bounds = array<i64: 1>, scalar_prefetch = 0 : i64, scratch_operands = 0 : i64, tpu.core_type = #tpu.core_type<tc>, window_params = [{transform_indices = @transform_0, window_bounds = array<i64: 200, 32>}, {pipeline_mode = #tpu.pipeline_mode<synchronous>, transform_indices = @transform_1, window_bounds = array<i64: 32, 64>}, {pipeline_mode = #tpu.pipeline_mode<synchronous>, transform_indices = @transform_2, window_bounds = array<i64: 64, 32>}, {pipeline_mode = #tpu.pipeline_mode<synchronous>, transform_indices = @transform_3, window_bounds = array<i64: 32, 16>}, {pipeline_mode = #tpu.pipeline_mode<synchronous>, transform_indices = @transform_4, window_bounds = array<i64: 1, 112>}, {transform_indices = @transform_5, window_bounds = array<i64: 200, 16>}]} {
    %c0 = arith.constant 0 : index
    %c0_0 = arith.constant 0 : index
    %0 = vector.load %arg1[%c0, %c0_0] : memref<200x32xbf16, #tpu.memory_space<vmem>>, vector<200x32xbf16>
    %c0_1 = arith.constant 0 : index
    %c0_2 = arith.constant 0 : index
    %1 = vector.load %arg2[%c0_1, %c0_2] : memref<32x64xbf16, #tpu.memory_space<vmem>>, vector<32x64xbf16>
    %cst = arith.constant dense<0.000000e+00> : vector<200x64xf32>
    %2 = tpu.matmul %0, %1, %cst {dimension_numbers = #tpu.dot_dimension_numbers<[1], [0], [0], [1], [0, 0, 1, 1], [], []>} : vector<200x32xbf16>, vector<32x64xbf16>, vector<200x64xf32> -> vector<200x64xf32>
    %c0_3 = arith.constant 0 : index
    %c0_4 = arith.constant 0 : index
    %3 = vector.load %arg5[%c0_3, %c0_4] : memref<1x112xf32, #tpu.memory_space<vmem>>, vector<1x64xf32>
    %4 = vector.broadcast %3 : vector<1x64xf32> to vector<200x64xf32>
    %5 = arith.addf %2, %4 : vector<200x64xf32>
    %cst_5 = arith.constant 0.000000e+00 : f32
    %6 = vector.broadcast %cst_5 : f32 to vector<200x64xf32>
    %7 = arith.maximumf %5, %6 : vector<200x64xf32>
    %8 = arith.truncf %7 : vector<200x64xf32> to vector<200x64xbf16>
    %c0_6 = arith.constant 0 : index
    %c0_7 = arith.constant 0 : index
    %9 = vector.load %arg3[%c0_6, %c0_7] : memref<64x32xbf16, #tpu.memory_space<vmem>>, vector<64x32xbf16>
    %cst_8 = arith.constant dense<0.000000e+00> : vector<200x32xf32>
    %10 = tpu.matmul %8, %9, %cst_8 {dimension_numbers = #tpu.dot_dimension_numbers<[1], [0], [0], [1], [0, 0, 1, 1], [], []>} : vector<200x64xbf16>, vector<64x32xbf16>, vector<200x32xf32> -> vector<200x32xf32>
    %c0_9 = arith.constant 0 : index
    %c64 = arith.constant 64 : index
    %11 = vector.load %arg5[%c0_9, %c64] : memref<1x112xf32, #tpu.memory_space<vmem>>, vector<1x32xf32>
    %12 = vector.broadcast %11 : vector<1x32xf32> to vector<200x32xf32>
    %13 = arith.addf %10, %12 : vector<200x32xf32>
    %cst_10 = arith.constant 0.000000e+00 : f32
    %14 = vector.broadcast %cst_10 : f32 to vector<200x32xf32>
    %15 = arith.maximumf %13, %14 : vector<200x32xf32>
    %16 = arith.truncf %15 : vector<200x32xf32> to vector<200x32xbf16>
    %c0_11 = arith.constant 0 : index
    %c0_12 = arith.constant 0 : index
    %17 = vector.load %arg4[%c0_11, %c0_12] : memref<32x16xbf16, #tpu.memory_space<vmem>>, vector<32x16xbf16>
    %cst_13 = arith.constant dense<0.000000e+00> : vector<200x16xf32>
    %18 = tpu.matmul %16, %17, %cst_13 {dimension_numbers = #tpu.dot_dimension_numbers<[1], [0], [0], [1], [0, 0, 1, 1], [], []>} : vector<200x32xbf16>, vector<32x16xbf16>, vector<200x16xf32> -> vector<200x16xf32>
    %c0_14 = arith.constant 0 : index
    %c96 = arith.constant 96 : index
    %19 = vector.load %arg5[%c0_14, %c96] : memref<1x112xf32, #tpu.memory_space<vmem>>, vector<1x16xf32>
    %20 = vector.broadcast %19 : vector<1x16xf32> to vector<200x16xf32>
    %21 = arith.addf %18, %20 : vector<200x16xf32>
    %c0_15 = arith.constant 0 : index
    %c0_16 = arith.constant 0 : index
    %22 = vector.load %arg6[%c0_15, %c0_16] : memref<200x16xf32, #tpu.memory_space<vmem>>, vector<200x16xf32>
    tpu.vector_store %arg6[%c0_15, %c0_16], %21 {strides = array<i32>} : memref<200x16xf32, #tpu.memory_space<vmem>>, vector<200x16xf32>,
    return
  }
  func.func @transform_0(%arg0: i32) -> (i32, i32) {
    %c0_i32 = arith.constant 0 : i32
    %c0_i32_0 = arith.constant 0 : i32
    return %arg0, %c0_i32 : i32, i32
  }
  func.func @transform_1(%arg0: i32) -> (i32, i32) {
    %c0_i32 = arith.constant 0 : i32
    %c0_i32_0 = arith.constant 0 : i32
    %c0_i32_1 = arith.constant 0 : i32
    return %c0_i32, %c0_i32_0 : i32, i32
  }
  func.func @transform_2(%arg0: i32) -> (i32, i32) {
    %c0_i32 = arith.constant 0 : i32
    %c0_i32_0 = arith.constant 0 : i32
    %c0_i32_1 = arith.constant 0 : i32
    return %c0_i32, %c0_i32_0 : i32, i32
  }
  func.func @transform_3(%arg0: i32) -> (i32, i32) {
    %c0_i32 = arith.constant 0 : i32
    %c0_i32_0 = arith.constant 0 : i32
    %c0_i32_1 = arith.constant 0 : i32
    return %c0_i32, %c0_i32_0 : i32, i32
  }
  func.func @transform_4(%arg0: i32) -> (i32, i32) {
    %c0_i32 = arith.constant 0 : i32
    %c0_i32_0 = arith.constant 0 : i32
    %c0_i32_1 = arith.constant 0 : i32
    return %c0_i32, %c0_i32_0 : i32, i32
  }
  func.func @transform_5(%arg0: i32) -> (i32, i32) {
    %c0_i32 = arith.constant 0 : i32
    %c0_i32_0 = arith.constant 0 : i32
    return %arg0, %c0_i32 : i32, i32
  }
}

</mosaic_0001>

<bundles_post_ra>
// kernel: dnn_forward.1
= control target key start
LH: loop header
LB: loop body
LE: loop exit
PB: predicated region body
PF: predicated region fallthrough
CT: control target
= control target key end

     0   :  { %v1128_v0 = vmov 0.0   ;;  %vm1129_vm0 = vmmov 0   ;;  %vm132_vm1 = vcmask 261120   ;;  %s1130_s30 = smov 64   ;;  %vm381_vm2 = vcmask 523264   ;;  %s1547_s1 = inlined_call_operand.vmem [shape: bf16[32,64], index: 1, kind: input, shape index: {}]   ;;  %s1548_s0 = inlined_call_operand.vmem [shape: bf16[200,32], index: 0, kind: input, shape index: {}]   ;;  %s1549_s2 = inlined_call_operand.vmem [shape: bf16[64,32], index: 2, kind: input, shape index: {}]   ;;  %s1550_s4 = inlined_call_operand.vmem [shape: f32[1,112], index: 4, kind: input, shape index: {}]   ;;  %s1551_s3 = inlined_call_operand.vmem [shape: bf16[32,16], index: 3, kind: input, shape index: {}]   ;;  %s1552_s5 = inlined_call_operand.vmem [shape: f32[200,16], index: 5, kind: output, shape index: {}]  }
   0x1   :  { %927 = vmatprep.subr.bf16.mxu0 %v1128_v0  ;;  %v1107_v1 = vld [vmem:[%s1547_s1] sm:$0xff]   ;;  %931 = vmatprep.mubr.msk.bf16.mxu0 %vm1129_vm0, %v1128_v0  ;;  %v1108_v2 = vld [vmem:[%s1547_s1 + $0x8] sm:$0xff]   ;;  %v1116_v4 = vld [vmem:[%s1548_s0 + $0x38] sm:$0xff]   ;;  %vm789_vm3 = vcmask 130048  }
   0x2   :  { %1099 = vmatprep.subr.bf16.mxu1 %v1128_v0  ;;  %959 = vmatprep.mubr.msk.bf16.mxu1 %vm1129_vm0, %v1128_v0  ;;  %v1109_v3 = vld [vmem:[%s1548_s0] sm:$0xff]   ;;  %v1110_v5 = vld [vmem:[%s1548_s0 + $0x8] sm:$0xff]   ;;  %v1111_v9 = vld [vmem:[%s1548_s0 + $0x10] sm:$0xff]  }
   0x3   :  { %928 = vmatpush3.bf16.msra.mxu0 %v1107_v1  ;;  %1101 = vmatpush3.bf16.msra.mxu1 %v1107_v1  ;;  %v1117_v6 = vld [vmem:[%s1548_s0 + $0x40] sm:$0xff]   ;;  %v1123_v8 = vld [vmem:[%s1549_s2 + $0x8] sm:$0xff]   ;;  %v1124_v10 = vld [vmem:[%s1549_s2 + $0x10] sm:$0xff]  }
   0x4   :  { %929 = vmatprep.subr.bf16.mxu0 %v1128_v0  ;;  %1100 = vmatprep.subr.bf16.mxu1 %v1128_v0  ;;  %v1122_v7 = vld [vmem:[%s1549_s2] sm:$0xff]   ;;  %v1118_v11 = vld [vmem:[%s1548_s0 + $0x48] sm:$0xff]   ;;  %v1125_v12 = vld [vmem:[%s1549_s2 + $0x18] sm:$0xff]  }
   0x5   :  { %v1112_v13 = vld [vmem:[%s1548_s0 + $0x18] sm:$0xff]   ;;  %v1119_v14 = vld [vmem:[%s1548_s0 + $0x50] sm:$0xff]   ;;  %v1113_v15 = vld [vmem:[%s1548_s0 + $0x20] sm:$0xff]  }
   0x6   :  { %v1120_v16 = vld [vmem:[%s1548_s0 + $0x58] sm:$0xff]   ;;  %v1114_v17 = vld [vmem:[%s1548_s0 + $0x28] sm:$0xff]   ;;  %v1121_v18 = vld [vmem:[%s1548_s0 + $0x60] ss:$0 sps:$4 sm:$0xff]  }
   0x7   :  { %930 = vmatpush3.bf16.msra.mxu0 %v1108_v2  ;;  %1102 = vmatpush3.bf16.msra.mxu1 %v1108_v2  ;;  %v1115_v19 = vld [vmem:[%s1548_s0 + $0x30] sm:$0xff]   ;;  %v1274_v20 = vld [vmem:[%s1550_s4] ss:$0 sm:$0xff]  ;;  %v1127_v22 = vld [vmem:[%s1551_s3 + $0x8] sm:$0xff]  }
   0x8   :  { %983 = vmatprep.subr.bf16.mxu1 %v1128_v0  ;;  %1043 = vmatprep.subr.bf16.mxu0 %v1128_v0  ;;  %v1126_v21 = vld [vmem:[%s1551_s3] sm:$0xff]   ;;  %s1131_s3 = smov 32  }
   0x9   :  { %378 = vrot.lane.b32.xlu0 %v1274_v20, %s1130_s30 }
   0xa   :  { %932 = vmatmul.mubr.msk.bf16.vlgmr.msra.gmra.mrb[0].mxu0 %vm132_vm1, %v1109_v3  ;;  %960 = vmatmul.mubr.msk.bf16.vlgmr.msra.gmra.mrb[0].mxu1 %vm132_vm1, %v1116_v4 }
   0xb   :  { %935 = vmatprep.mubr.msk.bf16.mxu0 %vm1129_vm0, %v1128_v0  ;;  %963 = vmatprep.mubr.msk.bf16.mxu1 %vm1129_vm0, %v1128_v0 }
   0xc   :  { %984 = vmatpush3.bf16.msra.mxu1 %v1122_v7  ;;  %1044 = vmatpush3.bf16.msra.mxu0 %v1126_v21 }
   0xd   :  { %985 = vmatprep.subr.bf16.mxu1 %v1128_v0  ;;  %1045 = vmatprep.subr.bf16.mxu0 %v1128_v0 }
   0xe   :  { %611 = vrot.lane.b32.xlu0 %v1274_v20, %s1131_s3 }
  0x10   :  { %986 = vmatpush3.bf16.msra.mxu1 %v1123_v8  ;;  %1046 = vmatpush3.bf16.msra.mxu0 %v1127_v22 }
  0x11   :  { %987 = vmatprep.subr.bf16.mxu1 %v1128_v0 }
  0x12   :  { %936 = vmatmul.mubr.msk.bf16.gmra.mrb[4].mxu0 %vm132_vm1, %v1110_v5  ;;  %964 = vmatmul.mubr.msk.bf16.gmra.mrb[4].mxu1 %vm132_vm1, %v1117_v6 }
  0x13   :  { %939 = vmatprep.mubr.msk.bf16.mxu0 %vm1129_vm0, %v1128_v0  ;;  %967 = vmatprep.mubr.msk.bf16.mxu1 %vm1129_vm0, %v1128_v0 }
  0x14   :  { %988 = vmatpush3.bf16.msra.mxu1 %v1124_v10 }
  0x15   :  { %989 = vmatprep.subr.bf16.mxu1 %v1128_v0 }
  0x18   :  { %990 = vmatpush3.bf16.msra.mxu1 %v1125_v12 }
  0x1a   :  { %940 = vmatmul.mubr.msk.bf16.gmra.mrb[8].mxu0 %vm132_vm1, %v1111_v9  ;;  %968 = vmatmul.mubr.msk.bf16.gmra.mrb[8].mxu1 %vm132_vm1, %v1118_v11 }
  0x1b   :  { %943 = vmatprep.mubr.msk.bf16.mxu0 %vm1129_vm0, %v1128_v0  ;;  %971 = vmatprep.mubr.msk.bf16.mxu1 %vm1129_vm0, %v1128_v0 }
  0x22   :  { %944 = vmatmul.mubr.msk.bf16.gmra.mrb[12].mxu0 %vm132_vm1, %v1112_v13  ;;  %972 = vmatmul.mubr.msk.bf16.gmra.mrb[12].mxu1 %vm132_vm1, %v1119_v14 }
  0x23   :  { %947 = vmatprep.mubr.msk.bf16.mxu0 %vm1129_vm0, %v1128_v0  ;;  %975 = vmatprep.mubr.msk.bf16.mxu1 %vm1129_vm0, %v1128_v0 }
  0x2a   :  { %948 = vmatmul.mubr.msk.bf16.gmra.mrb[16].mxu0 %vm132_vm1, %v1113_v15  ;;  %976 = vmatmul.mubr.msk.bf16.gmra.mrb[16].mxu1 %vm132_vm1, %v1120_v16 }
  0x2b   :  { %951 = vmatprep.mubr.msk.bf16.mxu0 %vm1129_vm0, %v1128_v0  ;;  %979 = vmatprep.mubr.msk.bf16.mxu1 %vm1129_vm0, %v1128_v0 }
  0x32   :  { %952 = vmatmul.mubr.msk.bf16.gmra.mrb[20].mxu0 %vm132_vm1, %v1114_v17  ;;  %980 = vmatmul.mubr.msk.bf16.gmra.mrb[20].mxu1 %vm132_vm1, %v1121_v18 }
  0x33   :  { %955 = vmatprep.mubr.msk.bf16.mxu0 %vm1129_vm0, %v1128_v0  ;;  %991 = vmatprep.mubr.msk.bf16.mxu1 %vm1129_vm0, %v1128_v0 }
  0x3a   :  { %956 = vmatmul.mubr.msk.bf16.gmra.mrb[24].mxu0 %vm132_vm1, %v1115_v19 }
  0x3b   :  { %1047 = vmatprep.mubr.msk.bf16.mxu0 %vm1129_vm0, %v1128_v0 }
  0xdd   :  { %v206_v23 = vpop.f32.mrb[0].mxu0  ;;  %v262_v27 = vpop.f32.mrb[0].mxu1 }
  0xde   :  { %v207_v24 = vadd.f32 %v1274_v20, %v206_v23  ;;  %v933_v25 = vpop.f32.mrb[1].mxu0  ;;  %v263_v30 = vadd.f32 %v1274_v20, %v262_v27  ;;  %v961_v31 = vpop.f32.mrb[1].mxu1 }
  0xdf   :  { %v209_v26 = vpop.f32.mrb[2].mxu0  ;;  %v265_v32 = vpop.f32.mrb[2].mxu1 }
  0xe0   :  { %v210_v28 = vadd.f32 %v1274_v20, %v209_v26  ;;  %v934_v29 = vpop.f32.mrb[3].mxu0  ;;  %v308_v33 = vmax.f32 %v207_v24, 0.0  ;;  %v322_v35 = vmax.f32 %v263_v30, 0.0  ;;  %v266_v36 = vadd.f32 %v1274_v20, %v265_v32  ;;  %v962_v37 = vpop.f32.mrb[3].mxu1 }
  0xe2   :  { %v309_v34 = vmax.f32 %v210_v28, 0.0  ;;  %v323_v39 = vmax.f32 %v266_v36, 0.0 }
  0xe4   :  { %v333_v38 = vpack.c.bf16 %v309_v34, %v308_v33  ;;  %v1290_v43 = vpack.c.bf16 %v323_v39, %v322_v35 }
  0xe5   :  { %v214_v40 = vpop.f32.mrb[4].mxu0  ;;  %v270_v45 = vpop.f32.mrb[4].mxu1 }
  0xe6   :  { %v215_v41 = vadd.f32 %v1274_v20, %v214_v40  ;;  %v937_v42 = vpop.f32.mrb[5].mxu0  ;;  %992 = vmatmul.mubr.msk.bf16.vlgmr.msra.gmra.mrb[24].mxu1 %vm381_vm2, %v333_v38  ;;  %v271_v48 = vadd.f32 %v1274_v20, %v270_v45  ;;  %v965_v49 = vpop.f32.mrb[5].mxu1 }
  0xe7   :  { %v217_v44 = vpop.f32.mrb[6].mxu0  ;;  %995 = vmatprep.mubr.msk.bf16.mxu1 %vm1129_vm0, %v1128_v0  ;;  %v273_v50 = vpop.f32.mrb[6].mxu1 }
  0xe8   :  { %v218_v46 = vadd.f32 %v1274_v20, %v217_v44  ;;  %v938_v47 = vpop.f32.mrb[7].mxu0  ;;  %v310_v51 = vmax.f32 %v215_v41, 0.0  ;;  %v324_v53 = vmax.f32 %v271_v48, 0.0  ;;  %v274_v54 = vadd.f32 %v1274_v20, %v273_v50  ;;  %v966_v55 = vpop.f32.mrb[7].mxu1 }
  0xea   :  { %v311_v52 = vmax.f32 %v218_v46, 0.0  ;;  %v325_v57 = vmax.f32 %v274_v54, 0.0 }
  0xec   :  { %v334_v56 = vpack.c.bf16 %v311_v52, %v310_v51  ;;  %v1299_v61 = vpack.c.bf16 %v325_v57, %v324_v53 }
  0xed   :  { %v222_v58 = vpop.f32.mrb[8].mxu0  ;;  %v278_v63 = vpop.f32.mrb[8].mxu1 }
  0xee   :  { %v223_v59 = vadd.f32 %v1274_v20, %v222_v58  ;;  %v941_v60 = vpop.f32.mrb[9].mxu0  ;;  %996 = vmatmul.mubr.msk.bf16.gmra.mrb[28].mxu1 %vm381_vm2, %v334_v56  ;;  %v279_v3 = vadd.f32 %v1274_v20, %v278_v63  ;;  %v969_v4 = vpop.f32.mrb[9].mxu1 }
  0xef   :  { %v225_v62 = vpop.f32.mrb[10].mxu0  ;;  %999 = vmatprep.mubr.msk.bf16.mxu1 %vm1129_vm0, %v1128_v0  ;;  %v281_v5 = vpop.f32.mrb[10].mxu1 }
  0xf0   :  { %v226_v1 = vadd.f32 %v1274_v20, %v225_v62  ;;  %v942_v2 = vpop.f32.mrb[11].mxu0  ;;  %v312_v6 = vmax.f32 %v223_v59, 0.0  ;;  %v326_v8 = vmax.f32 %v279_v3, 0.0  ;;  %v282_v9 = vadd.f32 %v1274_v20, %v281_v5  ;;  %v970_v10 = vpop.f32.mrb[11].mxu1 }
  0xf2   :  { %v313_v7 = vmax.f32 %v226_v1, 0.0  ;;  %v327_v12 = vmax.f32 %v282_v9, 0.0 }
  0xf4   :  { %v335_v11 = vpack.c.bf16 %v313_v7, %v312_v6  ;;  %v1308_v16 = vpack.c.bf16 %v327_v12, %v326_v8 }
  0xf5   :  { %v230_v13 = vpop.f32.mrb[12].mxu0  ;;  %v286_v18 = vpop.f32.mrb[12].mxu1 }
  0xf6   :  { %v231_v14 = vadd.f32 %v1274_v20, %v230_v13  ;;  %v945_v15 = vpop.f32.mrb[13].mxu0  ;;  %1000 = vmatmul.mubr.msk.bf16.gmra.mrb[32].mxu1 %vm381_vm2, %v335_v11  ;;  %v287_v22 = vadd.f32 %v1274_v20, %v286_v18  ;;  %v973_v23 = vpop.f32.mrb[13].mxu1 }
  0xf7   :  { %v233_v17 = vpop.f32.mrb[14].mxu0  ;;  %1003 = vmatprep.mubr.msk.bf16.mxu1 %vm1129_vm0, %v1128_v0  ;;  %v289_v24 = vpop.f32.mrb[14].mxu1 }
  0xf8   :  { %v234_v19 = vadd.f32 %v1274_v20, %v233_v17  ;;  %v946_v21 = vpop.f32.mrb[15].mxu0  ;;  %v314_v25 = vmax.f32 %v231_v14, 0.0  ;;  %v328_v27 = vmax.f32 %v287_v22, 0.0  ;;  %v290_v28 = vadd.f32 %v1274_v20, %v289_v24  ;;  %v974_v29 = vpop.f32.mrb[15].mxu1 }
  0xf9   :  { %v1356_v13 = vpop.permute.xlu0 %378 }
  0xfa   :  { %v315_v26 = vmax.f32 %v234_v19, 0.0  ;;  %v329_v31 = vmax.f32 %v290_v28, 0.0 }
  0xfc   :  { %v336_v30 = vpack.c.bf16 %v315_v26, %v314_v25  ;;  %v343_v35 = vpack.c.bf16 %v329_v31, %v328_v27 }
  0xfd   :  { %v238_v32 = vpop.f32.mrb[16].mxu0  ;;  %v294_v37 = vpop.f32.mrb[16].mxu1 }
  0xfe   :  { %v239_v33 = vadd.f32 %v1274_v20, %v238_v32  ;;  %v949_v34 = vpop.f32.mrb[17].mxu0  ;;  %1004 = vmatmul.mubr.msk.bf16.gmra.mrb[36].mxu1 %vm381_vm2, %v336_v30  ;;  %v295_v40 = vadd.f32 %v1274_v20, %v294_v37  ;;  %v977_v41 = vpop.f32.mrb[17].mxu1 }
  0xff   :  { %v241_v36 = vpop.f32.mrb[18].mxu0  ;;  %1007 = vmatprep.mubr.msk.bf16.mxu1 %vm1129_vm0, %v1128_v0  ;;  %v297_v42 = vpop.f32.mrb[18].mxu1 }
 0x100   :  { %v242_v38 = vadd.f32 %v1274_v20, %v241_v36  ;;  %v950_v39 = vpop.f32.mrb[19].mxu0  ;;  %v316_v44 = vmax.f32 %v239_v33, 0.0  ;;  %v330_v46 = vmax.f32 %v295_v40, 0.0  ;;  %v298_v47 = vadd.f32 %v1274_v20, %v297_v42  ;;  %v978_v48 = vpop.f32.mrb[19].mxu1 }
 0x102   :  { %v317_v45 = vmax.f32 %v242_v38, 0.0  ;;  %v331_v50 = vmax.f32 %v298_v47, 0.0 }
 0x104   :  { %v337_v49 = vpack.c.bf16 %v317_v45, %v316_v44  ;;  %v344_v54 = vpack.c.bf16 %v331_v50, %v330_v46 }
 0x105   :  { %v246_v51 = vpop.f32.mrb[20].mxu0  ;;  %v302_v56 = vpop.f32.mrb[20].mxu1 }
 0x106   :  { %v247_v52 = vadd.f32 %v1274_v20, %v246_v51  ;;  %v953_v53 = vpop.f32.mrb[21].mxu0  ;;  %1008 = vmatmul.mubr.msk.bf16.gmra.mrb[40].mxu1 %vm381_vm2, %v337_v49  ;;  %v981_v59 = vpop.f32.mrb[21].mxu1 }
 0x107   :  { %v249_v55 = vpop.f32.mrb[22].mxu0  ;;  %1011 = vmatprep.mubr.msk.bf16.mxu1 %vm1129_vm0, %v1128_v0  ;;  %v305_v60 = vpop.f32.mrb[22].mxu1 }
 0x108   :  { %v250_v57 = vadd.f32 %v1274_v20, %v249_v55  ;;  %v954_v58 = vpop.f32.mrb[23].mxu0  ;;  %v318_v62 = vmax.f32 %v247_v52, 0.0  ;;  %v982_v1 = vpop.f32.mrb[23].mxu1 }
 0x10a   :  { %v319_v63 = vmax.f32 %v250_v57, 0.0 }
 0x10c   :  { %v338_v2 = vpack.c.bf16 %v319_v63, %v318_v62 }
 0x10d   :  { %v254_v3 = vpop.f32.mrb[24].mxu0 }
 0x10e   :  { %v255_v4 = vadd.f32 %v1274_v20, %v254_v3  ;;  %v957_v5 = vpop.f32.mrb[25].mxu0  ;;  %1012 = vmatmul.mubr.msk.bf16.gmra.mrb[44].mxu1 %vm381_vm2, %v338_v2 }
 0x10f   :  { %v257_v6 = vpop.f32.mrb[26].mxu0  ;;  %1015 = vmatprep.mubr.msk.bf16.mxu1 %vm1129_vm0, %v1128_v0 }
 0x110   :  { %v258_v7 = vadd.f32 %v1274_v20, %v257_v6  ;;  %v958_v8 = vpop.f32.mrb[27].mxu0  ;;  %v320_v9 = vmax.f32 %v255_v4, 0.0 }
 0x112   :  { %v321_v10 = vmax.f32 %v258_v7, 0.0 }
 0x114   :  { %v339_v11 = vpack.c.bf16 %v321_v10, %v320_v9 }
 0x116   :  { %1016 = vmatmul.mubr.msk.bf16.gmra.mrb[48].mxu1 %vm381_vm2, %v339_v11 }
 0x117   :  { %1019 = vmatprep.mubr.msk.bf16.mxu1 %vm1129_vm0, %v1128_v0 }
 0x11e   :  { %1020 = vmatmul.mubr.msk.bf16.gmra.mrb[52].mxu1 %vm381_vm2, %v1290_v43  ;;  %v303_v43 = vadd.f32 %v1274_v20, %v302_v56 }
 0x11f   :  { %1023 = vmatprep.mubr.msk.bf16.mxu1 %vm1129_vm0, %v1128_v0 }
 0x120   :  { %v332_v12 = vmax.f32 %v303_v43, 0.0 }
 0x126   :  { %1024 = vmatmul.mubr.msk.bf16.gmra.mrb[56].mxu1 %vm381_vm2, %v1299_v61  ;;  %v345_v61 = vpack.c.bf16 %v332_v12, %v332_v12 }
 0x127   :  { %1027 = vmatprep.mubr.msk.bf16.mxu1 %vm1129_vm0, %v1128_v0 }
 0x12e   :  { %1028 = vmatmul.mubr.msk.bf16.gmra.mrb[60].mxu1 %vm381_vm2, %v1308_v16 }
 0x12f   :  { %1031 = vmatprep.mubr.msk.bf16.mxu1 %vm1129_vm0, %v1128_v0 }
 0x136   :  { %1032 = vmatmul.mubr.msk.bf16.gmra.mrb[64].mxu1 %vm381_vm2, %v343_v35 }
 0x137   :  { %1035 = vmatprep.mubr.msk.bf16.mxu1 %vm1129_vm0, %v1128_v0 }
 0x13e   :  { %1036 = vmatmul.mubr.msk.bf16.gmra.mrb[68].mxu1 %vm381_vm2, %v344_v54 }
 0x13f   :  { %1039 = vmatprep.mubr.msk.bf16.mxu1 %vm1129_vm0, %v1128_v0 }
 0x146   :  { %1040 = vmatmul.mubr.msk.bf16.gmra.mrb[72].mxu1 %vm381_vm2, %v345_v61 }
 0x1b9   :  { %v455_v14 = vpop.f32.mrb[24].mxu1 }
 0x1ba   :  { %v456_v15 = vadd.f32 %v455_v14, %v1356_v13  ;;  %v993_v16 = vpop.f32.mrb[25].mxu1 }
 0x1bb   :  { %v458_v17 = vpop.f32.mrb[26].mxu1 }
 0x1bc   :  { %v459_v18 = vadd.f32 %v458_v17, %v1356_v13  ;;  %v994_v19 = vpop.f32.mrb[27].mxu1  ;;  %v557_v21 = vmax.f32 %v456_v15, 0.0 }
 0x1be   :  { %v558_v22 = vmax.f32 %v459_v18, 0.0 }
 0x1c0   :  { %v582_v23 = vpack.c.bf16 %v558_v22, %v557_v21 }
 0x1c1   :  { %v463_v24 = vpop.f32.mrb[28].mxu1 }
 0x1c2   :  { %v464_v25 = vadd.f32 %v463_v24, %v1356_v13  ;;  %v997_v26 = vpop.f32.mrb[29].mxu1  ;;  %1048 = vmatmul.mubr.msk.bf16.vlgmr.msra.gmra.mrb[28].mxu0 %vm132_vm1, %v582_v23 }
 0x1c3   :  { %v466_v20 = vpop.f32.mrb[30].mxu1  ;;  %1051 = vmatprep.mubr.msk.bf16.mxu0 %vm1129_vm0, %v1128_v0 }
 0x1c4   :  { %v467_v27 = vadd.f32 %v466_v20, %v1356_v13  ;;  %v998_v28 = vpop.f32.mrb[31].mxu1  ;;  %v559_v29 = vmax.f32 %v464_v25, 0.0 }
 0x1c6   :  { %v560_v30 = vmax.f32 %v467_v27, 0.0 }
 0x1c8   :  { %v583_v31 = vpack.c.bf16 %v560_v30, %v559_v29 }
 0x1c9   :  { %v471_v32 = vpop.f32.mrb[32].mxu1 }
 0x1ca   :  { %v472_v33 = vadd.f32 %v471_v32, %v1356_v13  ;;  %v1001_v34 = vpop.f32.mrb[33].mxu1  ;;  %1052 = vmatmul.mubr.msk.bf16.gmra.mrb[32].mxu0 %vm132_vm1, %v583_v31 }
 0x1cb   :  { %v474_v35 = vpop.f32.mrb[34].mxu1  ;;  %1055 = vmatprep.mubr.msk.bf16.mxu0 %vm1129_vm0, %v1128_v0 }
 0x1cc   :  { %v475_v36 = vadd.f32 %v474_v35, %v1356_v13  ;;  %v1002_v37 = vpop.f32.mrb[35].mxu1  ;;  %v561_v38 = vmax.f32 %v472_v33, 0.0 }
 0x1ce   :  { %v562_v39 = vmax.f32 %v475_v36, 0.0 }
 0x1d0   :  { %v584_v40 = vpack.c.bf16 %v562_v39, %v561_v38 }
 0x1d1   :  { %v479_v41 = vpop.f32.mrb[36].mxu1 }
 0x1d2   :  { %v480_v42 = vadd.f32 %v479_v41, %v1356_v13  ;;  %v1005_v44 = vpop.f32.mrb[37].mxu1  ;;  %1056 = vmatmul.mubr.msk.bf16.gmra.mrb[36].mxu0 %vm132_vm1, %v584_v40 }
 0x1d3   :  { %v482_v45 = vpop.f32.mrb[38].mxu1  ;;  %1059 = vmatprep.mubr.msk.bf16.mxu0 %vm1129_vm0, %v1128_v0 }
 0x1d4   :  { %v483_v46 = vadd.f32 %v482_v45, %v1356_v13  ;;  %v1006_v47 = vpop.f32.mrb[39].mxu1  ;;  %v563_v48 = vmax.f32 %v480_v42, 0.0 }
 0x1d6   :  { %v564_v49 = vmax.f32 %v483_v46, 0.0 }
 0x1d8   :  { %v585_v50 = vpack.c.bf16 %v564_v49, %v563_v48 }
 0x1d9   :  { %v487_v51 = vpop.f32.mrb[40].mxu1 }
 0x1da   :  { %v488_v52 = vadd.f32 %v487_v51, %v1356_v13  ;;  %v1009_v53 = vpop.f32.mrb[41].mxu1  ;;  %1060 = vmatmul.mubr.msk.bf16.gmra.mrb[40].mxu0 %vm132_vm1, %v585_v50 }
 0x1db   :  { %v490_v54 = vpop.f32.mrb[42].mxu1  ;;  %1063 = vmatprep.mubr.msk.bf16.mxu0 %vm1129_vm0, %v1128_v0 }
 0x1dc   :  { %v491_v55 = vadd.f32 %v490_v54, %v1356_v13  ;;  %v1010_v56 = vpop.f32.mrb[43].mxu1  ;;  %v565_v57 = vmax.f32 %v488_v52, 0.0 }
 0x1de   :  { %v566_v58 = vmax.f32 %v491_v55, 0.0 }
 0x1e0   :  { %v586_v59 = vpack.c.bf16 %v566_v58, %v565_v57 }
 0x1e1   :  { %v495_v60 = vpop.f32.mrb[44].mxu1 }
 0x1e2   :  { %v496_v62 = vadd.f32 %v495_v60, %v1356_v13  ;;  %v1013_v63 = vpop.f32.mrb[45].mxu1  ;;  %1064 = vmatmul.mubr.msk.bf16.gmra.mrb[44].mxu0 %vm132_vm1, %v586_v59 }
 0x1e3   :  { %v498_v1 = vpop.f32.mrb[46].mxu1  ;;  %1067 = vmatprep.mubr.msk.bf16.mxu0 %vm1129_vm0, %v1128_v0 }
 0x1e4   :  { %v499_v2 = vadd.f32 %v498_v1, %v1356_v13  ;;  %v1014_v3 = vpop.f32.mrb[47].mxu1  ;;  %v567_v4 = vmax.f32 %v496_v62, 0.0 }
 0x1e6   :  { %v568_v5 = vmax.f32 %v499_v2, 0.0 }
 0x1e8   :  { %v587_v6 = vpack.c.bf16 %v568_v5, %v567_v4 }
 0x1e9   :  { %v503_v7 = vpop.f32.mrb[48].mxu1 }
 0x1ea   :  { %v504_v8 = vadd.f32 %v503_v7, %v1356_v13  ;;  %v1017_v9 = vpop.f32.mrb[49].mxu1  ;;  %1068 = vmatmul.mubr.msk.bf16.gmra.mrb[48].mxu0 %vm132_vm1, %v587_v6  ;;  %v1420_v6 = vpop.permute.xlu0 %611 }
 0x1eb   :  { %v506_v10 = vpop.f32.mrb[50].mxu1  ;;  %1071 = vmatprep.mubr.msk.bf16.mxu0 %vm1129_vm0, %v1128_v0 }
 0x1ec   :  { %v507_v11 = vadd.f32 %v506_v10, %v1356_v13  ;;  %v1018_v43 = vpop.f32.mrb[51].mxu1  ;;  %v569_v12 = vmax.f32 %v504_v8, 0.0 }
 0x1ee   :  { %v570_v61 = vmax.f32 %v507_v11, 0.0 }
 0x1f0   :  { %v588_v14 = vpack.c.bf16 %v570_v61, %v569_v12 }
 0x1f1   :  { %v511_v15 = vpop.f32.mrb[52].mxu1 }
 0x1f2   :  { %v512_v16 = vadd.f32 %v511_v15, %v1356_v13  ;;  %v1021_v17 = vpop.f32.mrb[53].mxu1  ;;  %1072 = vmatmul.mubr.msk.bf16.gmra.mrb[52].mxu0 %vm132_vm1, %v588_v14 }
 0x1f3   :  { %v514_v18 = vpop.f32.mrb[54].mxu1  ;;  %1075 = vmatprep.mubr.msk.bf16.mxu0 %vm1129_vm0, %v1128_v0 }
 0x1f4   :  { %v515_v19 = vadd.f32 %v514_v18, %v1356_v13  ;;  %v1022_v21 = vpop.f32.mrb[55].mxu1  ;;  %v571_v22 = vmax.f32 %v512_v16, 0.0 }
 0x1f6   :  { %v572_v23 = vmax.f32 %v515_v19, 0.0 }
 0x1f8   :  { %v589_v24 = vpack.c.bf16 %v572_v23, %v571_v22 }
 0x1f9   :  { %v519_v25 = vpop.f32.mrb[56].mxu1 }
 0x1fa   :  { %v520_v26 = vadd.f32 %v519_v25, %v1356_v13  ;;  %v1025_v20 = vpop.f32.mrb[57].mxu1  ;;  %1076 = vmatmul.mubr.msk.bf16.gmra.mrb[56].mxu0 %vm132_vm1, %v589_v24 }
 0x1fb   :  { %v522_v27 = vpop.f32.mrb[58].mxu1  ;;  %1079 = vmatprep.mubr.msk.bf16.mxu0 %vm1129_vm0, %v1128_v0 }
 0x1fc   :  { %v523_v28 = vadd.f32 %v522_v27, %v1356_v13  ;;  %v1026_v29 = vpop.f32.mrb[59].mxu1  ;;  %v573_v30 = vmax.f32 %v520_v26, 0.0 }
 0x1fe   :  { %v574_v31 = vmax.f32 %v523_v28, 0.0 }
 0x200   :  { %v590_v32 = vpack.c.bf16 %v574_v31, %v573_v30 }
 0x201   :  { %v527_v33 = vpop.f32.mrb[60].mxu1 }
 0x202   :  { %v528_v34 = vadd.f32 %v527_v33, %v1356_v13  ;;  %v1029_v35 = vpop.f32.mrb[61].mxu1  ;;  %1080 = vmatmul.mubr.msk.bf16.gmra.mrb[60].mxu0 %vm132_vm1, %v590_v32 }
 0x203   :  { %v530_v36 = vpop.f32.mrb[62].mxu1  ;;  %1083 = vmatprep.mubr.msk.bf16.mxu0 %vm1129_vm0, %v1128_v0 }
 0x204   :  { %v531_v37 = vadd.f32 %v530_v36, %v1356_v13  ;;  %v1030_v38 = vpop.f32.mrb[63].mxu1  ;;  %v575_v39 = vmax.f32 %v528_v34, 0.0 }
 0x206   :  { %v576_v40 = vmax.f32 %v531_v37, 0.0 }
 0x208   :  { %v591_v41 = vpack.c.bf16 %v576_v40, %v575_v39 }
 0x209   :  { %v535_v42 = vpop.f32.mrb[64].mxu1 }
 0x20a   :  { %v536_v44 = vadd.f32 %v535_v42, %v1356_v13  ;;  %v1033_v45 = vpop.f32.mrb[65].mxu1  ;;  %1084 = vmatmul.mubr.msk.bf16.gmra.mrb[64].mxu0 %vm132_vm1, %v591_v41 }
 0x20b   :  { %v538_v46 = vpop.f32.mrb[66].mxu1  ;;  %1087 = vmatprep.mubr.msk.bf16.mxu0 %vm1129_vm0, %v1128_v0 }
 0x20c   :  { %v539_v47 = vadd.f32 %v538_v46, %v1356_v13  ;;  %v1034_v48 = vpop.f32.mrb[67].mxu1  ;;  %v577_v49 = vmax.f32 %v536_v44, 0.0 }
 0x20e   :  { %v578_v50 = vmax.f32 %v539_v47, 0.0 }
 0x210   :  { %v592_v51 = vpack.c.bf16 %v578_v50, %v577_v49 }
 0x211   :  { %v543_v52 = vpop.f32.mrb[68].mxu1 }
 0x212   :  { %v544_v53 = vadd.f32 %v543_v52, %v1356_v13  ;;  %v1037_v54 = vpop.f32.mrb[69].mxu1  ;;  %1088 = vmatmul.mubr.msk.bf16.gmra.mrb[68].mxu0 %vm132_vm1, %v592_v51 }
 0x213   :  { %v546_v55 = vpop.f32.mrb[70].mxu1  ;;  %1091 = vmatprep.mubr.msk.bf16.mxu0 %vm1129_vm0, %v1128_v0 }
 0x214   :  { %v547_v56 = vadd.f32 %v546_v55, %v1356_v13  ;;  %v1038_v57 = vpop.f32.mrb[71].mxu1  ;;  %v579_v58 = vmax.f32 %v544_v53, 0.0 }
 0x216   :  { %v580_v59 = vmax.f32 %v547_v56, 0.0 }
 0x218   :  { %v593_v60 = vpack.c.bf16 %v580_v59, %v579_v58 }
 0x219   :  { %v551_v62 = vpop.f32.mrb[72].mxu1 }
 0x21a   :  { %v552_v63 = vadd.f32 %v551_v62, %v1356_v13  ;;  %v1041_v1 = vpop.f32.mrb[73].mxu1  ;;  %1092 = vmatmul.mubr.msk.bf16.gmra.mrb[72].mxu0 %vm132_vm1, %v593_v60 }
 0x21b   :  { %v554_v2 = vpop.f32.mrb[74].mxu1  ;;  %1095 = vmatprep.mubr.msk.bf16.mxu0 %vm1129_vm0, %v1128_v0 }
 0x21c   :  { %v581_v3 = vmax.f32 %v552_v63, 0.0  ;;  %v1042_v4 = vpop.f32.mrb[75].mxu1 }
 0x21e   :  { %v594_v5 = vpack.c.bf16 %v581_v3, %v581_v3 }
 0x222   :  { %1096 = vmatmul.mubr.msk.bf16.gmra.mrb[76].mxu0 %vm132_vm1, %v594_v5 }
 0x295   :  { %v687_v7 = vpop.f32.mrb[28].mxu0 }
 0x296   :  { %v688_v8 = vadd.f32 %v687_v7, %v1420_v6  ;;  %v1049_v9 = vpop.f32.mrb[29].mxu0 }
 0x297   :  { %v690_v13 = vpop.f32.mrb[30].mxu0 }
 0x298   :  { %790 = vst.msk [vmem:[%s1552_s5] sm:$0xff] %vm789_vm3, %v688_v8  ;;  %v691_v0 = vadd.f32 %v690_v13, %v1420_v6  ;;  %v1050_v10 = vpop.f32.mrb[31].mxu0 }
 0x29a   :  { %791 = vst.msk [vmem:[%s1552_s5 + $0x8] sm:$0xff] %vm789_vm3, %v691_v0 }
 0x29d   :  { %v695_v11 = vpop.f32.mrb[32].mxu0 }
 0x29e   :  { %v696_v43 = vadd.f32 %v695_v11, %v1420_v6  ;;  %v1053_v12 = vpop.f32.mrb[33].mxu0 }
 0x29f   :  { %v698_v61 = vpop.f32.mrb[34].mxu0 }
 0x2a0   :  { %792 = vst.msk [vmem:[%s1552_s5 + $0x10] sm:$0xff] %vm789_vm3, %v696_v43  ;;  %v699_v14 = vadd.f32 %v698_v61, %v1420_v6  ;;  %v1054_v15 = vpop.f32.mrb[35].mxu0 }
 0x2a2   :  { %793 = vst.msk [vmem:[%s1552_s5 + $0x18] sm:$0xff] %vm789_vm3, %v699_v14 }
 0x2a5   :  { %v703_v16 = vpop.f32.mrb[36].mxu0 }
 0x2a6   :  { %v704_v17 = vadd.f32 %v703_v16, %v1420_v6  ;;  %v1057_v18 = vpop.f32.mrb[37].mxu0 }
 0x2a7   :  { %v706_v19 = vpop.f32.mrb[38].mxu0 }
 0x2a8   :  { %794 = vst.msk [vmem:[%s1552_s5 + $0x20] sm:$0xff] %vm789_vm3, %v704_v17  ;;  %v707_v21 = vadd.f32 %v706_v19, %v1420_v6  ;;  %v1058_v22 = vpop.f32.mrb[39].mxu0 }
 0x2aa   :  { %795 = vst.msk [vmem:[%s1552_s5 + $0x28] sm:$0xff] %vm789_vm3, %v707_v21 }
 0x2ad   :  { %v711_v23 = vpop.f32.mrb[40].mxu0 }
 0x2ae   :  { %v712_v24 = vadd.f32 %v711_v23, %v1420_v6  ;;  %v1061_v25 = vpop.f32.mrb[41].mxu0 }
 0x2af   :  { %v714_v26 = vpop.f32.mrb[42].mxu0 }
 0x2b0   :  { %796 = vst.msk [vmem:[%s1552_s5 + $0x30] sm:$0xff] %vm789_vm3, %v712_v24  ;;  %v715_v20 = vadd.f32 %v714_v26, %v1420_v6  ;;  %v1062_v27 = vpop.f32.mrb[43].mxu0 }
 0x2b2   :  { %797 = vst.msk [vmem:[%s1552_s5 + $0x38] sm:$0xff] %vm789_vm3, %v715_v20 }
 0x2b5   :  { %v719_v28 = vpop.f32.mrb[44].mxu0 }
 0x2b6   :  { %v720_v29 = vadd.f32 %v719_v28, %v1420_v6  ;;  %v1065_v30 = vpop.f32.mrb[45].mxu0 }
 0x2b7   :  { %v722_v31 = vpop.f32.mrb[46].mxu0 }
 0x2b8   :  { %798 = vst.msk [vmem:[%s1552_s5 + $0x40] sm:$0xff] %vm789_vm3, %v720_v29  ;;  %v723_v32 = vadd.f32 %v722_v31, %v1420_v6  ;;  %v1066_v33 = vpop.f32.mrb[47].mxu0 }
 0x2ba   :  { %799 = vst.msk [vmem:[%s1552_s5 + $0x48] sm:$0xff] %vm789_vm3, %v723_v32 }
 0x2bd   :  { %v727_v34 = vpop.f32.mrb[48].mxu0 }
 0x2be   :  { %v728_v35 = vadd.f32 %v727_v34, %v1420_v6  ;;  %v1069_v36 = vpop.f32.mrb[49].mxu0 }
 0x2bf   :  { %v730_v37 = vpop.f32.mrb[50].mxu0 }
 0x2c0   :  { %800 = vst.msk [vmem:[%s1552_s5 + $0x50] sm:$0xff] %vm789_vm3, %v728_v35  ;;  %v731_v38 = vadd.f32 %v730_v37, %v1420_v6  ;;  %v1070_v39 = vpop.f32.mrb[51].mxu0 }
 0x2c2   :  { %801 = vst.msk [vmem:[%s1552_s5 + $0x58] sm:$0xff] %vm789_vm3, %v731_v38 }
 0x2c5   :  { %v735_v40 = vpop.f32.mrb[52].mxu0 }
 0x2c6   :  { %v736_v41 = vadd.f32 %v735_v40, %v1420_v6  ;;  %v1073_v42 = vpop.f32.mrb[53].mxu0 }
 0x2c7   :  { %v738_v44 = vpop.f32.mrb[54].mxu0 }
 0x2c8   :  { %802 = vst.msk [vmem:[%s1552_s5 + $0x60] sm:$0xff] %vm789_vm3, %v736_v41  ;;  %v739_v45 = vadd.f32 %v738_v44, %v1420_v6  ;;  %v1074_v46 = vpop.f32.mrb[55].mxu0 }
 0x2ca   :  { %803 = vst.msk [vmem:[%s1552_s5 + $0x68] sm:$0xff] %vm789_vm3, %v739_v45 }
 0x2cd   :  { %v743_v47 = vpop.f32.mrb[56].mxu0 }
 0x2ce   :  { %v744_v48 = vadd.f32 %v743_v47, %v1420_v6  ;;  %v1077_v49 = vpop.f32.mrb[57].mxu0 }
 0x2cf   :  { %v746_v50 = vpop.f32.mrb[58].mxu0 }
 0x2d0   :  { %804 = vst.msk [vmem:[%s1552_s5 + $0x70] sm:$0xff] %vm789_vm3, %v744_v48  ;;  %v747_v51 = vadd.f32 %v746_v50, %v1420_v6  ;;  %v1078_v52 = vpop.f32.mrb[59].mxu0 }
 0x2d2   :  { %805 = vst.msk [vmem:[%s1552_s5 + $0x78] sm:$0xff] %vm789_vm3, %v747_v51 }
 0x2d5   :  { %v751_v53 = vpop.f32.mrb[60].mxu0 }
 0x2d6   :  { %v752_v54 = vadd.f32 %v751_v53, %v1420_v6  ;;  %v1081_v55 = vpop.f32.mrb[61].mxu0 }
 0x2d7   :  { %v754_v56 = vpop.f32.mrb[62].mxu0 }
 0x2d8   :  { %806 = vst.msk [vmem:[%s1552_s5 + $0x80] sm:$0xff] %vm789_vm3, %v752_v54  ;;  %v755_v57 = vadd.f32 %v754_v56, %v1420_v6  ;;  %v1082_v58 = vpop.f32.mrb[63].mxu0 }
 0x2da   :  { %807 = vst.msk [vmem:[%s1552_s5 + $0x88] sm:$0xff] %vm789_vm3, %v755_v57 }
 0x2dd   :  { %v759_v59 = vpop.f32.mrb[64].mxu0 }
 0x2de   :  { %v760_v60 = vadd.f32 %v759_v59, %v1420_v6  ;;  %v1085_v62 = vpop.f32.mrb[65].mxu0 }
 0x2df   :  { %v762_v63 = vpop.f32.mrb[66].mxu0 }
 0x2e0   :  { %808 = vst.msk [vmem:[%s1552_s5 + $0x90] sm:$0xff] %vm789_vm3, %v760_v60  ;;  %v763_v1 = vadd.f32 %v762_v63, %v1420_v6  ;;  %v1086_v2 = vpop.f32.mrb[67].mxu0 }
 0x2e2   :  { %809 = vst.msk [vmem:[%s1552_s5 + $0x98] sm:$0xff] %vm789_vm3, %v763_v1 }
 0x2e5   :  { %v767_v3 = vpop.f32.mrb[68].mxu0 }
 0x2e6   :  { %v768_v4 = vadd.f32 %v767_v3, %v1420_v6  ;;  %v1089_v5 = vpop.f32.mrb[69].mxu0 }
 0x2e7   :  { %v770_v7 = vpop.f32.mrb[70].mxu0 }
 0x2e8   :  { %810 = vst.msk [vmem:[%s1552_s5 + $0xa0] sm:$0xff] %vm789_vm3, %v768_v4  ;;  %v771_v8 = vadd.f32 %v770_v7, %v1420_v6  ;;  %v1090_v9 = vpop.f32.mrb[71].mxu0 }
 0x2ea   :  { %811 = vst.msk [vmem:[%s1552_s5 + $0xa8] sm:$0xff] %vm789_vm3, %v771_v8 }
 0x2ed   :  { %v775_v13 = vpop.f32.mrb[72].mxu0 }
 0x2ee   :  { %v776_v0 = vadd.f32 %v775_v13, %v1420_v6  ;;  %v1093_v10 = vpop.f32.mrb[73].mxu0 }
 0x2ef   :  { %v778_v11 = vpop.f32.mrb[74].mxu0 }
 0x2f0   :  { %812 = vst.msk [vmem:[%s1552_s5 + $0xb0] sm:$0xff] %vm789_vm3, %v776_v0  ;;  %v779_v43 = vadd.f32 %v778_v11, %v1420_v6  ;;  %v1094_v12 = vpop.f32.mrb[75].mxu0 }
 0x2f2   :  { %813 = vst.msk [vmem:[%s1552_s5 + $0xb8] sm:$0xff] %vm789_vm3, %v779_v43 }
 0x2f5   :  { %v783_v61 = vpop.f32.mrb[76].mxu0 }
 0x2f6   :  { %v784_v14 = vadd.f32 %v783_v61, %v1420_v6  ;;  %v1097_v15 = vpop.f32.mrb[77].mxu0 }
 0x2f7   :  { %v786_v16 = vpop.f32.mrb[78].mxu0 }
 0x2f8   :  { %814 = vst.msk [vmem:[%s1552_s5 + $0xc0] sm:$0xff] %vm789_vm3, %v784_v14  ;;  %v1098_v17 = vpop.f32.mrb[79].mxu0 }

</bundles_post_ra>
